<compile_context>
chip_gen: v5e
topology: v5e:2x2
jax: 0.10.0
libtpu: 0.0.40
codegen_flags: <defaults>
</compile_context>

<pallas_src>
import functools
import math

import jax
import jax.numpy as jnp
from jax.experimental import pallas as pl
from jax.experimental.pallas import tpu as pltpu

NEG_SLOPE = 0.01  # nn.LeakyReLU() default negative_slope


def _leaky_relu(x):
    return jnp.where(x > 0, x, NEG_SLOPE * x)


def _round_up(n, m):
    return ((n + m - 1) // m) * m


def mlp_kernel(x_ref, w1_ref, b1_ref, w2_ref, b2_ref, w3_ref, b3_ref, o_ref):
    """One batch tile. x_ref: [input_size, TILE_B] (features x batch, batch in lanes).

    Weights are in torch layout [out, in]; biases are f32 [out, 1] columns.
    """
    x = x_ref[...]
    # fc1 + LeakyReLU  (f32 accumulation, f32 elementwise)
    h = jnp.dot(w1_ref[...], x, preferred_element_type=jnp.float32) + b1_ref[...]
    h = _leaky_relu(h).astype(w2_ref.dtype)
    # fc2 + LeakyReLU
    h = jnp.dot(w2_ref[...], h, preferred_element_type=jnp.float32) + b2_ref[...]
    h = _leaky_relu(h).astype(w3_ref.dtype)
    # fc3 (no activation) -> lane-dense [1, TILE_B] output row
    o_ref[...] = (
        jnp.dot(w3_ref[...], h, preferred_element_type=jnp.float32) + b3_ref[...]
    ).astype(o_ref.dtype)


@functools.partial(jax.jit, static_argnames=("tile_b", "compute_dtype"))
def regression_model_forward(x, params, *, tile_b=1024, compute_dtype=jnp.float32):
    """x: [B, input_size] float32 -> [B, 1] float32."""
    w1, b1, w2, b2, w3, b3 = params
    B, in_size = x.shape

    # Batch tile: multiple of 128 lanes; don't over-tile tiny batches.
    tile_b = _round_up(max(1, min(tile_b, B)), 128)
    padded_b = _round_up(B, tile_b)
    num_tiles = padded_b // tile_b

    # Lane-dense layout: features on sublanes, batch on lanes. Transpose (+ optional
    # bf16 cast) is fused layout plumbing in XLA; zero-pad the ragged last tile.
    xt = x.T.astype(compute_dtype)
    if padded_b != B:
        xt = jnp.pad(xt, ((0, 0), (0, padded_b - B)))

    cast_w = lambda w: w.astype(compute_dtype)

    def resident(arr):
        # Whole-array block with constant index -> DMA'd once, stays resident in VMEM.
        return pl.BlockSpec(arr.shape, lambda i: (0, 0))

    out_row = pl.pallas_call(
        mlp_kernel,
        out_shape=jax.ShapeDtypeStruct((1, padded_b), jnp.float32),
        grid=(num_tiles,),
        in_specs=[
            pl.BlockSpec((in_size, tile_b), lambda i: (0, i)),  # streaming x tiles
            resident(w1), resident(b1),
            resident(w2), resident(b2),
            resident(w3), resident(b3),
        ],
        out_specs=pl.BlockSpec((1, tile_b), lambda i: (0, i)),
        compiler_params=pltpu.CompilerParams(
            dimension_semantics=("parallel",),   # batch tiles are independent
            vmem_limit_bytes=32 * 1024 * 1024,   # tiny tiles; safe on v5e/v6e/v7x
        ),
    )(xt, cast_w(w1), b1, cast_w(w2), b2, cast_w(w3), b3)

    return out_row[0, :B].reshape(B, 1)


def init_params(key, input_size):
    """torch.nn.Linear-style init: W [out,in], b [out,1], U(-1/sqrt(fan_in), 1/sqrt(fan_in))."""
    dims = [(input_size, 20), (20, 16), (16, 1)]
    params = []
    for fan_in, fan_out in dims:
        key, kw, kb = jax.random.split(key, 3)
        bound = 1.0 / math.sqrt(fan_in)
        w = jax.random.uniform(kw, (fan_out, fan_in), jnp.float32, -bound, bound)
        b = jax.random.uniform(kb, (fan_out, 1), jnp.float32, -bound, bound)
        params.extend([w, b])
    return tuple(params)


def reference_forward(x, params):
    """Plain-JAX reference of the PyTorch forward pass."""
    w1, b1, w2, b2, w3, b3 = params
    h = _leaky_relu(x @ w1.T + b1[:, 0])
    h = _leaky_relu(h @ w2.T + b2[:, 0])
    return h @ w3.T + b3[:, 0]


if __name__ == "__main__":
    key = jax.random.PRNGKey(0)
    k_x, k_p = jax.random.split(key)

    batch, input_size = 8, 32
    x = jax.random.normal(k_x, (batch, input_size), jnp.float32)
    params = init_params(k_p, input_size)

    ref = reference_forward(x, params)

    # f32 path: exact match against reference.
    out = jax.block_until_ready(regression_model_forward(x, params))
    assert out.shape == (batch, 1)
    assert jnp.allclose(out, ref, atol=1e-5, rtol=1e-5), "f32 Pallas output mismatch vs reference"

    # bf16 fast path (halves streamed x / weight bytes); looser tolerance.
    out_bf16 = jax.block_until_ready(
        regression_model_forward(x, params, compute_dtype=jnp.bfloat16)
    )
    assert out_bf16.shape == (batch, 1)
    assert jnp.allclose(out_bf16, ref, atol=5e-2, rtol=5e-2), "bf16 Pallas output mismatch vs reference"

    print("KERNEL_OK")
</pallas_src>

<mosaic_0001>
module attributes {stable_mosaic.version = 11 : i64} {
  func.func @mlp_kernel(%arg0: i32, %arg1: memref<32x128xf32, #tpu.memory_space<vmem>>, %arg2: memref<20x32xf32, #tpu.memory_space<vmem>>, %arg3: memref<20x1xf32, #tpu.memory_space<vmem>>, %arg4: memref<16x20xf32, #tpu.memory_space<vmem>>, %arg5: memref<16x1xf32, #tpu.memory_space<vmem>>, %arg6: memref<1x16xf32, #tpu.memory_space<vmem>>, %arg7: memref<1x1xf32, #tpu.memory_space<vmem>>, %arg8: memref<1x128xf32, #tpu.memory_space<vmem>>) attributes {dimension_semantics = [#tpu.dimension_semantics<parallel>], iteration_bounds = array<i64: 1>, scalar_prefetch = 0 : i64, scratch_operands = 0 : i64, tpu.core_type = #tpu.core_type<tc>, window_params = [{transform_indices = @transform_0, window_bounds = array<i64: 32, 128>}, {pipeline_mode = #tpu.pipeline_mode<synchronous>, transform_indices = @transform_1, window_bounds = array<i64: 20, 32>}, {pipeline_mode = #tpu.pipeline_mode<synchronous>, transform_indices = @transform_2, window_bounds = array<i64: 20, 1>}, {pipeline_mode = #tpu.pipeline_mode<synchronous>, transform_indices = @transform_3, window_bounds = array<i64: 16, 20>}, {pipeline_mode = #tpu.pipeline_mode<synchronous>, transform_indices = @transform_4, window_bounds = array<i64: 16, 1>}, {pipeline_mode = #tpu.pipeline_mode<synchronous>, transform_indices = @transform_5, window_bounds = array<i64: 1, 16>}, {pipeline_mode = #tpu.pipeline_mode<synchronous>, transform_indices = @transform_6, window_bounds = array<i64: 1, 1>}, {transform_indices = @transform_7, window_bounds = array<i64: 1, 128>}]} {
    %c0 = arith.constant 0 : index
    %c0_0 = arith.constant 0 : index
    %0 = vector.load %arg1[%c0, %c0_0] : memref<32x128xf32, #tpu.memory_space<vmem>>, vector<32x128xf32>
    %c0_1 = arith.constant 0 : index
    %c0_2 = arith.constant 0 : index
    %1 = vector.load %arg2[%c0_1, %c0_2] : memref<20x32xf32, #tpu.memory_space<vmem>>, vector<20x32xf32>
    %cst = arith.constant dense<0.000000e+00> : vector<20x128xf32>
    %2 = tpu.matmul %1, %0, %cst {dimension_numbers = #tpu.dot_dimension_numbers<[1], [0], [0], [1], [0, 0, 1, 1], [], []>} : vector<20x32xf32>, vector<32x128xf32>, vector<20x128xf32> -> vector<20x128xf32>
    %c0_3 = arith.constant 0 : index
    %c0_4 = arith.constant 0 : index
    %3 = vector.load %arg3[%c0_3, %c0_4] : memref<20x1xf32, #tpu.memory_space<vmem>>, vector<20x1xf32>
    %4 = vector.broadcast %3 : vector<20x1xf32> to vector<20x128xf32>
    %5 = arith.addf %2, %4 : vector<20x128xf32>
    %cst_5 = arith.constant 0.000000e+00 : f32
    %6 = vector.broadcast %cst_5 : f32 to vector<20x128xf32>
    %7 = arith.cmpf ogt, %5, %6 : vector<20x128xf32>
    %cst_6 = arith.constant 0.00999999977 : f32
    %8 = vector.broadcast %cst_6 : f32 to vector<20x128xf32>
    %9 = arith.mulf %8, %5 : vector<20x128xf32>
    %10 = arith.select %7, %5, %9 : vector<20x128xi1>, vector<20x128xf32>
    %c0_7 = arith.constant 0 : index
    %c0_8 = arith.constant 0 : index
    %11 = vector.load %arg4[%c0_7, %c0_8] : memref<16x20xf32, #tpu.memory_space<vmem>>, vector<16x20xf32>
    %cst_9 = arith.constant dense<0.000000e+00> : vector<16x128xf32>
    %12 = tpu.matmul %11, %10, %cst_9 {dimension_numbers = #tpu.dot_dimension_numbers<[1], [0], [0], [1], [0, 0, 1, 1], [], []>} : vector<16x20xf32>, vector<20x128xf32>, vector<16x128xf32> -> vector<16x128xf32>
    %c0_10 = arith.constant 0 : index
    %c0_11 = arith.constant 0 : index
    %13 = vector.load %arg5[%c0_10, %c0_11] : memref<16x1xf32, #tpu.memory_space<vmem>>, vector<16x1xf32>
    %14 = vector.broadcast %13 : vector<16x1xf32> to vector<16x128xf32>
    %15 = arith.addf %12, %14 : vector<16x128xf32>
    %cst_12 = arith.constant 0.000000e+00 : f32
    %16 = vector.broadcast %cst_12 : f32 to vector<16x128xf32>
    %17 = arith.cmpf ogt, %15, %16 : vector<16x128xf32>
    %cst_13 = arith.constant 0.00999999977 : f32
    %18 = vector.broadcast %cst_13 : f32 to vector<16x128xf32>
    %19 = arith.mulf %18, %15 : vector<16x128xf32>
    %20 = arith.select %17, %15, %19 : vector<16x128xi1>, vector<16x128xf32>
    %c0_14 = arith.constant 0 : index
    %c0_15 = arith.constant 0 : index
    %21 = vector.load %arg6[%c0_14, %c0_15] : memref<1x16xf32, #tpu.memory_space<vmem>>, vector<1x16xf32>
    %cst_16 = arith.constant dense<0.000000e+00> : vector<1x128xf32>
    %22 = tpu.matmul %21, %20, %cst_16 {dimension_numbers = #tpu.dot_dimension_numbers<[1], [0], [0], [1], [0, 0, 1, 1], [], []>} : vector<1x16xf32>, vector<16x128xf32>, vector<1x128xf32> -> vector<1x128xf32>
    %c0_17 = arith.constant 0 : index
    %c0_18 = arith.constant 0 : index
    %23 = vector.load %arg7[%c0_17, %c0_18] : memref<1x1xf32, #tpu.memory_space<vmem>>, vector<1x1xf32>
    %24 = vector.broadcast %23 : vector<1x1xf32> to vector<1x128xf32>
    %25 = arith.addf %22, %24 : vector<1x128xf32>
    %c0_19 = arith.constant 0 : index
    %c0_20 = arith.constant 0 : index
    %26 = vector.load %arg8[%c0_19, %c0_20] : memref<1x128xf32, #tpu.memory_space<vmem>>, vector<1x128xf32>
    tpu.vector_store %arg8[%c0_19, %c0_20], %25 {strides = array<i32>} : memref<1x128xf32, #tpu.memory_space<vmem>>, vector<1x128xf32>,
    return
  }
  func.func @transform_0(%arg0: i32) -> (i32, i32) {
    %c0_i32 = arith.constant 0 : i32
    %c0_i32_0 = arith.constant 0 : i32
    return %c0_i32, %arg0 : i32, i32
  }
  func.func @transform_1(%arg0: i32) -> (i32, i32) {
    %c0_i32 = arith.constant 0 : i32
    %c0_i32_0 = arith.constant 0 : i32
    %c0_i32_1 = arith.constant 0 : i32
    return %c0_i32, %c0_i32_0 : i32, i32
  }
  func.func @transform_2(%arg0: i32) -> (i32, i32) {
    %c0_i32 = arith.constant 0 : i32
    %c0_i32_0 = arith.constant 0 : i32
    %c0_i32_1 = arith.constant 0 : i32
    return %c0_i32, %c0_i32_0 : i32, i32
  }
  func.func @transform_3(%arg0: i32) -> (i32, i32) {
    %c0_i32 = arith.constant 0 : i32
    %c0_i32_0 = arith.constant 0 : i32
    %c0_i32_1 = arith.constant 0 : i32
    return %c0_i32, %c0_i32_0 : i32, i32
  }
  func.func @transform_4(%arg0: i32) -> (i32, i32) {
    %c0_i32 = arith.constant 0 : i32
    %c0_i32_0 = arith.constant 0 : i32
    %c0_i32_1 = arith.constant 0 : i32
    return %c0_i32, %c0_i32_0 : i32, i32
  }
  func.func @transform_5(%arg0: i32) -> (i32, i32) {
    %c0_i32 = arith.constant 0 : i32
    %c0_i32_0 = arith.constant 0 : i32
    %c0_i32_1 = arith.constant 0 : i32
    return %c0_i32, %c0_i32_0 : i32, i32
  }
  func.func @transform_6(%arg0: i32) -> (i32, i32) {
    %c0_i32 = arith.constant 0 : i32
    %c0_i32_0 = arith.constant 0 : i32
    %c0_i32_1 = arith.constant 0 : i32
    return %c0_i32, %c0_i32_0 : i32, i32
  }
  func.func @transform_7(%arg0: i32) -> (i32, i32) {
    %c0_i32 = arith.constant 0 : i32
    %c0_i32_0 = arith.constant 0 : i32
    return %c0_i32, %arg0 : i32, i32
  }
}

</mosaic_0001>

<bundles_post_ra>
// kernel: regression_model_forward.1
= control target key start
LH: loop header
LB: loop body
LE: loop exit
PB: predicated region body
PF: predicated region fallthrough
CT: control target
= control target key end

     0   :  { %v204_v2 = vmov 0   ;;  %vm53_vm0 = vcmask 261120   ;;  %vm119_vm2 = vcmask 1043456   ;;  %vm112_vm5 = vcmask 162816   ;;  %s296_s0 = inlined_call_operand.vmem [shape: f32[32,128], index: 0, kind: input, shape index: {}]   ;;  %s297_s2 = inlined_call_operand.vmem [shape: f32[20,1], index: 2, kind: input, shape index: {}]   ;;  %s298_s1 = inlined_call_operand.vmem [shape: f32[20,32], index: 1, kind: input, shape index: {}]   ;;  %s299_s4 = inlined_call_operand.vmem [shape: f32[16,1], index: 4, kind: input, shape index: {}]   ;;  %s300_s6 = inlined_call_operand.<no memory space> [shape: f32[1,1], index: 6, kind: input, shape index: {}]   ;;  %s301_s3 = inlined_call_operand.vmem [shape: f32[16,20], index: 3, kind: input, shape index: {}]   ;;  %s302_s5 = inlined_call_operand.vmem [shape: f32[1,16], index: 5, kind: input, shape index: {}]   ;;  %s303_s7 = inlined_call_operand.vmem [shape: f32[1,128], index: 7, kind: output, shape index: {}]  }
   0x1   :  { %v31_v0 = vld [vmem:[%s296_s0 + $0x18] sm:$0xff]  ;;  %v30_v1 = vld [vmem:[%s296_s0 + $0x10] sm:$0xff]  ;;  %201 = vset.pattern.permute.xlu0 %v204_v2  ;;  %202 = vset.pattern.permute.xlu1 %v204_v2  ;;  %v29_v3 = vld [vmem:[%s296_s0 + $0x8] sm:$0xff]  ;;  %v12_v14 = vstv %s300_s6  ;;  %vm160_vm8 = vcmask 130048  }
   0x2   :  { %196 = vmatpush.msra.mxu3 %v31_v0  ;;  %75 = vmatpush.msra.mxu0 %v31_v0  ;;  %v37_v4 = vld [vmem:[%s297_s2 + $0x10] sm:$0xf]  ;;  %v35_v5 = vld [vmem:[%s297_s2] sm:$0xff]  ;;  %v33_v7 = vld [vmem:[%s298_s1 + $0x8] sm:$0xff]  ;;  %13 = vst [vmem:[#allocation2] sm:$0x1] %v12_v14 }
   0x3   :  { %203 = vset.pattern.permute.xlu2 %v204_v2  ;;  %50 = vperm.xlu0 %201, %v37_v4   ;;  %v28_v6 = vld [vmem:[%s296_s0] sm:$0xff]  ;;  %v36_v9 = vld [vmem:[%s297_s2 + $0x8] sm:$0xff]  ;;  %v34_v11 = vld [vmem:[%s298_s1 + $0x10] sm:$0xf] }
   0x4   :  { %197 = vmatpush.msra.mxu3 %v30_v1  ;;  %76 = vmatpush.msra.mxu0 %v30_v1  ;;  %v32_v8 = vld [vmem:[%s298_s1] sm:$0xff]  ;;  %v101_v10 = vld [vmem:[%s299_s4 + $0x8] sm:$0xff] }
   0x5   :  { %40 = vperm.xlu1 %202, %v35_v5   ;;  %v100_v13 = vld [vmem:[%s299_s4] sm:$0xff]  ;;  %v99_v31 = vld [vmem:[%s301_s3 + $0x8] sm:$0xff] }
   0x6   :  { %198 = vmatpush.msra.mxu3 %v29_v3  ;;  %77 = vmatpush.msra.mxu0 %v29_v3  ;;  %v98_v29 = vld [vmem:[%s301_s3] sm:$0xff] }
   0x7   :  { %104 = vperm.xlu2 %203, %v100_v13   ;;  %v152_v41 = vld [vmem:[%s302_s5] sm:$0x1] }
   0x8   :  { %199 = vmatpush.msra.mxu3 %v28_v6  ;;  %78 = vmatpush.msra.mxu0 %v28_v6 }
   0x9   :  { %190 = vmatmul.msk.f32.vlgmr.msra.gmra.mxu3 %vm53_vm0, %v33_v7  ;;  %189 = vmatmul.msk.f32.vlgmr.msra.gmra.mxu0 %vm53_vm0, %v32_v8  ;;  %v153_v16 = vld [vmem:[#allocation2] sm:$0x1] }
   0xb   :  { %45 = vperm.xlu0 %201, %v36_v9  }
   0xd   :  { %109 = vperm.xlu1 %202, %v101_v10  }
   0xf   :  { %156 = vperm.xlu2 %203, %v153_v16  }
  0x11   :  { %191 = vmatmul.msk.f32.gmra.mxu3 %vm53_vm0, %v34_v11 }
  0x61   :  { %v105_v33 = vpop.permute.xlu2 %104 }
  0x69   :  { %v157_v43 = vpop.permute.xlu2 %156 }
  0x6a   :  { %v159_v44 = vperm.slane %v157_v43, 0 }
  0x75   :  { %v51_v12 = vpop.permute.xlu0 %50 }
  0x77   :  { %v41_v20 = vpop.permute.xlu1 %40 }
  0x7d   :  { %v46_v17 = vpop.permute.xlu0 %45 }
  0x7f   :  { %v110_v35 = vpop.permute.xlu1 %109 }
  0x86   :  { %v80_v18 = vpop.f32.mrf.mxu0 }
  0x87   :  { %v81_v23 = vadd.f32 %v80_v18, %v41_v20 }
  0x89   :  { %v92_v27 = vmul.f32 0.01, %v81_v23  ;;  %vm89_vm4 = vcmp.gt.f32.partialorder %v81_v23, 0.0 }
  0x8b   :  { %v95_v30 = vsel %vm89_vm4, %v81_v23, %v92_v27 }
  0x8c   :  { %v83_v15 = vpop.f32.mrf.mxu3 }
  0x8d   :  { %v84_v19 = vadd.f32 %v83_v15, %v46_v17 }
  0x8f   :  { %v93_v25 = vmul.f32 0.01, %v84_v19  ;;  %vm90_vm3 = vcmp.gt.f32.partialorder %v84_v19, 0.0 }
  0x91   :  { %v96_v28 = vsel %vm90_vm3, %v84_v19, %v93_v25 }
  0x94   :  { %v86_v21 = vpop.f32.mrf.mxu3 }
  0x95   :  { %v87_v22 = vadd.f32 %v86_v21, %v51_v12 }
  0x97   :  { %vm91_vm1 = vcmp.gt.f32.partialorder %v87_v22, 0.0  ;;  %v94_v24 = vmul.f32 0.01, %v87_v22 }
  0x99   :  { %v97_v26 = vsel %vm91_vm1, %v87_v22, %v94_v24 }
  0x9a   :  { %192 = vmatpush.msk.msra.mxu1 %vm119_vm2, %v97_v26 }
  0x9c   :  { %137 = vmatpush.msra.mxu1 %v96_v28 }
  0x9e   :  { %138 = vmatpush.msra.mxu1 %v95_v30 }
  0x9f   :  { %193 = vmatmul.msk.f32.vlgmr.msra.gmra.mxu1 %vm112_vm5, %v98_v29 }
  0xa7   :  { %194 = vmatmul.msk.f32.gmra.mxu1 %vm112_vm5, %v99_v31 }
 0x11c   :  { %v140_v32 = vpop.f32.mrf.mxu1 }
 0x11d   :  { %v141_v34 = vadd.f32 %v140_v32, %v105_v33 }
 0x11f   :  { %v148_v39 = vmul.f32 0.01, %v141_v34  ;;  %vm146_vm7 = vcmp.gt.f32.partialorder %v141_v34, 0.0 }
 0x121   :  { %v150_v42 = vsel %vm146_vm7, %v141_v34, %v148_v39 }
 0x124   :  { %v143_v36 = vpop.f32.mrf.mxu1 }
 0x125   :  { %v144_v37 = vadd.f32 %v143_v36, %v110_v35 }
 0x127   :  { %vm147_vm6 = vcmp.gt.f32.partialorder %v144_v37, 0.0  ;;  %v149_v38 = vmul.f32 0.01, %v144_v37 }
 0x129   :  { %v151_v40 = vsel %vm147_vm6, %v144_v37, %v149_v38 }
 0x12a   :  { %178 = vmatpush.msra.mxu2 %v151_v40 }
 0x12c   :  { %179 = vmatpush.msra.mxu2 %v150_v42 }
 0x12d   :  { %195 = vmatmul.msk.f32.vlgmr.msra.gmra.mxu2 %vm160_vm8, %v152_v41 }
 0x1b0   :  { %v181_v45 = vpop.f32.mrf.mxu2 }
 0x1b1   :  { %v182_v46 = vadd.f32 %v181_v45, %v159_v44 }
 0x1b3   :  { %184 = vst [vmem:[%s303_s7] sm:$0x1] %v182_v46 }

</bundles_post_ra>
